<compile_context>
chip_gen: v6e
topology: v6e:2x2x1
jax: 0.10.0
libtpu: 0.0.40
codegen_flags: <defaults>
</compile_context>

<pallas_src>
import functools
import math
from typing import NamedTuple, Optional

import jax
import jax.numpy as jnp
from jax import lax
from jax.experimental import pallas as pl
from jax.experimental.pallas import tpu as pltpu

_INV_SQRT2 = 1.0 / math.sqrt(2.0)
_TANH_C = math.sqrt(2.0 / math.pi)


def _round_up(a: int, b: int) -> int:
    return ((a + b - 1) // b) * b


def _gelu_f32(g, approx: bool):
    if approx:  # tanh approximation (EUP tanh) -- opt-in only
        return 0.5 * g * (1.0 + jnp.tanh(_TANH_C * (g + 0.044715 * g * g * g)))
    return 0.5 * g * (1.0 + lax.erf(g * _INV_SQRT2))  # exact; torch default


# ----------------------------------------------------------------------------- kernels
def _geglu_kernel(x_ref, wh_ref, wg_ref, b_ref, o_ref, *, approx: bool):
    # x_ref: (tm, K)   wh_ref/wg_ref: (K, tn)   b_ref: (2, tn) f32   o_ref: (tm, tn)
    x = x_ref[...]
    b = b_ref[...]
    h = jnp.dot(x, wh_ref[...], preferred_element_type=jnp.float32) + b[0:1, :]
    g = jnp.dot(x, wg_ref[...], preferred_element_type=jnp.float32) + b[1:2, :]
    o_ref[...] = (h * _gelu_f32(g, approx)).astype(o_ref.dtype)


def _geglu_kernel_ktiled(x_ref, wh_ref, wg_ref, b_ref, o_ref, acc_h, acc_g, *, approx: bool):
    # Grid = (N tiles, M tiles, K tiles); K is the innermost ("arbitrary") axis.
    k = pl.program_id(2)

    @pl.when(k == 0)
    def _():
        acc_h[...] = jnp.zeros_like(acc_h)
        acc_g[...] = jnp.zeros_like(acc_g)

    x = x_ref[...]
    acc_h[...] += jnp.dot(x, wh_ref[...], preferred_element_type=jnp.float32)
    acc_g[...] += jnp.dot(x, wg_ref[...], preferred_element_type=jnp.float32)

    @pl.when(k == pl.num_programs(2) - 1)
    def _():
        b = b_ref[...]
        h = acc_h[...] + b[0:1, :]
        g = acc_g[...] + b[1:2, :]
        o_ref[...] = (h * _gelu_f32(g, approx)).astype(o_ref.dtype)


# ----------------------------------------------------------------------------- VMEM budgeting
def _physical_vmem_bytes() -> int:
    try:
        info = pltpu.get_tpu_info()
        for name in ("vmem_capacity_bytes", "vmem_bytes", "vmem_size_bytes"):
            v = getattr(info, name, None)
            if v:
                return int(v)
    except Exception:
        pass
    return 64 * 1024 * 1024  # conservative: assume v7x-sized (64 MiB) VMEM


def _vmem_budget_bytes() -> int:
    cap = _physical_vmem_bytes()
    if cap >= 128 * 1024 * 1024:          # v5e / v6e: 128 MiB physical -> use ~100 MiB
        return 100 * 1024 * 1024
    return (cap * 3) // 4                 # v7x: 64 MiB physical -> ~48 MiB with headroom


def _vmem_bytes_est(tm, tn, kdim, xbytes, wbytes, obytes, *, ktiled, wbuf=2, xbuf=2):
    est = (xbuf * tm * kdim * xbytes            # x tile (multi-buffered)
           + wbuf * 2 * kdim * tn * wbytes      # W_h + W_g tiles
           + 2 * 2 * tn * 4                     # fused bias (2, tn)
           + 2 * tm * tn * obytes               # output tile
           + 3 * tm * tn * 4)                   # f32 h / g / gelu temporaries
    if ktiled:
        est += 2 * tm * tn * 4                  # acc_h / acc_g scratch
    return est


def _choose_tiles(M, K, N, xbytes, wbytes, obytes, budget,
                  tm_req, tn_req, tk_req, row_align):
    # ---- tm: divide M when possible so the hot path never pads/copies x ----
    if tm_req is not None:
        tm = max(row_align, _round_up(min(tm_req, _round_up(M, row_align)), row_align))
    else:
        tm_cap = 512 if (budget >= 96 * 1024 * 1024 and M >= 512) else 256
        while tm_cap > 128 and 2 * tm_cap * K * xbytes > budget // 3:
            tm_cap //= 2
        if M <= tm_cap:
            tm = max(row_align, _round_up(M, row_align))
        else:
            tm = 0
            for t in range(tm_cap, 63, -64):
                if t % row_align == 0 and M % t == 0:
                    tm = t
                    break
            if tm == 0:
                tm = tm_cap
    # ---- tn candidates: lane-aligned divisors of N (largest first), or full-extent ----
    if tn_req is not None:
        if tn_req >= N or N % 128 != 0:
            tn_cands = [N]
        else:
            t = max(128, (tn_req // 128) * 128)
            while N % t != 0:
                t -= 128
            tn_cands = [t]
    else:
        if N % 128 != 0:
            tn_cands = [N]                          # small / unaligned out_dim: one full tile
        else:
            tn_cands = [N] if N <= 2048 else []
            tn_cands += [c for c in (2048, 1024, 512, 256, 128) if c < N and N % c == 0]
            if not tn_cands:
                tn_cands = [128]
    # ---- prefer the full reduction dim (no K tiling) ----
    force_kt = (tk_req is not None and 0 < tk_req < K
                and K % tk_req == 0 and tk_req % 128 == 0)
    if not force_kt:
        for tn in tn_cands:
            if _vmem_bytes_est(tm, tn, K, xbytes, wbytes, obytes, ktiled=False) <= budget:
                return tm, tn, K
    # ---- K tiling (huge in_dim, mainly v7x): tk must divide K and be a 128 multiple ----
    if force_kt:
        tks = [tk_req]
    else:
        tks = [t for t in range(((K - 1) // 128) * 128, 127, -128) if K % t == 0]
    for tn in tn_cands:
        for tk in tks:
            if _vmem_bytes_est(tm, tn, tk, xbytes, wbytes, obytes, ktiled=True) <= budget:
                return tm, tn, tk
    return tm, tn_cands[-1], (tks[-1] if tks else K)   # fallback: smallest tiles


def _make_spec(block_shape, index_map, nbuf=2):
    if nbuf > 2 and hasattr(pl, "Buffered"):
        try:
            return pl.BlockSpec(block_shape, index_map, pipeline_mode=pl.Buffered(nbuf))
        except TypeError:
            pass
    return pl.BlockSpec(block_shape, index_map)


# ----------------------------------------------------------------------------- parameters
class GegluParams(NamedTuple):
    w_h: jax.Array       # (in_dim, N)  value-half weight (N == out_dim, or lane-padded)
    w_g: jax.Array       # (in_dim, N)  gate-half weight
    bias2: jax.Array     # (2, N) float32; row 0 = value bias, row 1 = gate bias
    out_dim: int


def prepare_geglu_params(weight, bias, *, param_dtype=None) -> GegluParams:
    """Split / cast / (rarely) pad the fused Linear parameters ONCE, at init time.

    weight: (in_dim, 2*out_dim)  -- transposed torch nn.Linear weight.
    bias:   (2*out_dim,)
    param_dtype: storage/compute dtype for the weights (e.g. jnp.bfloat16).
    """
    in_dim, two_out = weight.shape
    out_dim = two_out // 2
    w_h = weight[:, :out_dim]
    w_g = weight[:, out_dim:]
    bias2 = jnp.stack([bias[:out_dim], bias[out_dim:]]).astype(jnp.float32)
    if param_dtype is not None:
        w_h = w_h.astype(param_dtype)
        w_g = w_g.astype(param_dtype)
    # Only pad the output dim when it is both too wide for a single full-extent tile and
    # not lane aligned (rare); done once here so the hot path never copies weights.
    if out_dim > 1024 and out_dim % 128 != 0:
        n_pad = _round_up(out_dim, 128)
        w_h = jnp.pad(w_h, ((0, 0), (0, n_pad - out_dim)))
        w_g = jnp.pad(w_g, ((0, 0), (0, n_pad - out_dim)))
        bias2 = jnp.pad(bias2, ((0, 0), (0, n_pad - out_dim)))
    return GegluParams(w_h, w_g, bias2, out_dim)


# ----------------------------------------------------------------------------- hot path
def geglu_proj_prepared(x, params: GegluParams, *, out_dtype=None,
                        tm: Optional[int] = None, tn: Optional[int] = None,
                        tk: Optional[int] = None, gelu_approx: bool = False,
                        weight_buffers: int = 3):
    w_h, w_g, bias2, out_dim = params
    in_dim, N = w_h.shape
    orig_shape = x.shape
    assert orig_shape[-1] == in_dim, "last dim of x must equal in_dim"
    out_dtype = out_dtype if out_dtype is not None else x.dtype

    M = 1
    for d in orig_shape[:-1]:
        M *= d
    x2d = x.reshape(M, in_dim)
    if x2d.dtype != w_h.dtype:
        # Keep the MXU on a single dtype (avoids a silent f32 multi-pass matmul).
        x2d = x2d.astype(w_h.dtype)

    xbytes = x2d.dtype.itemsize
    wbytes = w_h.dtype.itemsize
    obytes = jnp.dtype(out_dtype).itemsize
    row_align = 16 if x2d.dtype == jnp.bfloat16 else 8

    budget = _vmem_budget_bytes()
    phys = _physical_vmem_bytes()
    tm_e, tn_e, tk_e = _choose_tiles(M, in_dim, N, xbytes, wbytes, obytes, budget,
                                     tm, tn, tk, row_align)

    # Pad only a ragged M tail (tm is chosen to divide M whenever possible).
    M_pad = _round_up(M, tm_e)
    if M_pad != M:
        x2d = jnp.pad(x2d, ((0, M_pad - M), (0, 0)))

    Mt = M_pad // tm_e
    Nt = N // tn_e
    ktiled = tk_e < in_dim
    Kt = in_dim // tk_e if ktiled else 1

    bytes_x = M_pad * in_dim * xbytes
    bytes_w = 2 * in_dim * N * wbytes

    # Loop order: restream whichever operand is cheaper to re-read from HBM.
    if ktiled:
        n_outer = True                                     # both stream; order immaterial
    else:
        n_outer = (Nt * bytes_x + bytes_w) <= (bytes_x + Mt * bytes_w)

    # Deeper prefetch of the operand that stays resident across the inner loop.
    base_est = _vmem_bytes_est(tm_e, tn_e, tk_e, xbytes, wbytes, obytes, ktiled=ktiled)
    wbuf, xbuf = 2, 2
    wb = weight_buffers if weight_buffers else 2
    if (not ktiled) and wb > 2 and Mt >= 2 and Nt >= 2:
        if n_outer:
            extra = (wb - 2) * 2 * in_dim * tn_e * wbytes
            if base_est + extra <= budget:
                wbuf, base_est = wb, base_est + extra
        else:
            extra = (wb - 2) * tm_e * in_dim * xbytes
            if base_est + extra <= budget:
                xbuf, base_est = wb, base_est + extra

    vmem_limit = int(min(max(budget, int(1.25 * base_est)), int(phys * 0.85)))
    vmem_limit = max(vmem_limit, 32 * 1024 * 1024)

    # Honest cost estimate (includes the restreaming factor).
    if ktiled:
        hbm_reads = Nt * bytes_x + Mt * bytes_w
    elif n_outer:
        hbm_reads = Nt * bytes_x + bytes_w
    else:
        hbm_reads = bytes_x + Mt * bytes_w
    cost = pl.CostEstimate(
        flops=2 * M_pad * in_dim * 2 * N,
        transcendentals=M_pad * N,
        bytes_accessed=hbm_reads + 2 * N * 4 + M_pad * N * obytes,
    )

    if not ktiled:
        kernel = functools.partial(_geglu_kernel, approx=gelu_approx)
        if n_outer:
            grid = (Nt, Mt)
            x_map = lambda j, i: (i, 0)
            w_map = lambda j, i: (0, j)
            b_map = lambda j, i: (0, j)
            o_map = lambda j, i: (i, j)
        else:
            grid = (Mt, Nt)
            x_map = lambda i, j: (i, 0)
            w_map = lambda i, j: (0, j)
            b_map = lambda i, j: (0, j)
            o_map = lambda i, j: (i, j)
        in_specs = [
            _make_spec((tm_e, in_dim), x_map, xbuf),
            _make_spec((in_dim, tn_e), w_map, wbuf),
            _make_spec((in_dim, tn_e), w_map, wbuf),
            pl.BlockSpec((2, tn_e), b_map),
        ]
        out_spec = pl.BlockSpec((tm_e, tn_e), o_map)
        scratch = ()
        dims = ("parallel", "parallel")
    else:
        kernel = functools.partial(_geglu_kernel_ktiled, approx=gelu_approx)
        grid = (Nt, Mt, Kt)
        in_specs = [
            pl.BlockSpec((tm_e, tk_e), lambda j, i, k: (i, k)),
            pl.BlockSpec((tk_e, tn_e), lambda j, i, k: (k, j)),
            pl.BlockSpec((tk_e, tn_e), lambda j, i, k: (k, j)),
            pl.BlockSpec((2, tn_e), lambda j, i, k: (0, j)),
        ]
        out_spec = pl.BlockSpec((tm_e, tn_e), lambda j, i, k: (i, j))
        scratch = (pltpu.VMEM((tm_e, tn_e), jnp.float32),
                   pltpu.VMEM((tm_e, tn_e), jnp.float32))
        dims = ("parallel", "parallel", "arbitrary")

    out = pl.pallas_call(
        kernel,
        out_shape=jax.ShapeDtypeStruct((M_pad, N), out_dtype),
        grid_spec=pltpu.PrefetchScalarGridSpec(
            num_scalar_prefetch=0,
            grid=grid,
            in_specs=in_specs,
            out_specs=out_spec,
            scratch_shapes=scratch,
        ),
        compiler_params=pltpu.CompilerParams(
            dimension_semantics=dims,
            vmem_limit_bytes=vmem_limit,
        ),
        cost_estimate=cost,
    )(x2d, w_h, w_g, bias2)

    if M_pad != M or N != out_dim:
        out = out[:M, :out_dim]
    return out.reshape(*orig_shape[:-1], out_dim)


def geglu_proj(x, weight, bias, *, compute_dtype=None, gelu_approx=False,
               tm=None, tn=None, tk=None, weight_buffers=3):
    """Convenience wrapper: prepares params and runs the kernel.

    For repeated calls (the real hot path), call prepare_geglu_params() once and use
    geglu_proj_prepared() directly so the weight split/cast is not re-issued per call.
    """
    param_dtype = compute_dtype if compute_dtype is not None else x.dtype
    params = prepare_geglu_params(weight, bias, param_dtype=param_dtype)
    return geglu_proj_prepared(x, params, out_dtype=x.dtype, tm=tm, tn=tn, tk=tk,
                               gelu_approx=gelu_approx, weight_buffers=weight_buffers)


# ----------------------------------------------------------------------------- reference & tests
def geglu_ref(x, weight, bias):
    proj = jnp.einsum("...d,df->...f", x.astype(jnp.float32),
                      weight.astype(jnp.float32)) + bias.astype(jnp.float32)
    out_dim = weight.shape[1] // 2
    h, g = proj[..., :out_dim], proj[..., out_dim:]
    y = h * (0.5 * g * (1.0 + lax.erf(g * _INV_SQRT2)))
    return y.astype(x.dtype)


def _make_inputs(key, B, S, in_dim, out_dim, dtype=jnp.float32):
    kx, kw, kb = jax.random.split(key, 3)
    x = jax.random.normal(kx, (B, S, in_dim), dtype=dtype)
    bound = 1.0 / math.sqrt(in_dim)   # nn.Linear-style init
    w = jax.random.uniform(kw, (in_dim, 2 * out_dim), dtype=jnp.float32,
                           minval=-bound, maxval=bound)
    b = jax.random.uniform(kb, (2 * out_dim,), dtype=jnp.float32,
                           minval=-bound, maxval=bound)
    return x, w, b


if __name__ == "__main__":
    # 1) Module-scale case: batch=2, seq=8, in_dim=32, out_dim=32 (single tile).
    x, w, b = _make_inputs(jax.random.PRNGKey(0), 2, 8, 32, 32)
    y = jax.block_until_ready(geglu_proj(x, w, b))
    assert y.shape == (2, 8, 32)
    assert jnp.allclose(y, geglu_ref(x, w, b), atol=1e-4, rtol=1e-4), "mismatch (case 1)"

    # 2) Ragged token count + non-128-aligned out_dim (tiny M-tail pad, full-extent N tile).
    x, w, b = _make_inputs(jax.random.PRNGKey(1), 2, 77, 64, 160)
    y = jax.block_until_ready(geglu_proj(x, w, b))
    assert y.shape == (2, 77, 160)
    assert jnp.allclose(y, geglu_ref(x, w, b), atol=1e-4, rtol=1e-4), "mismatch (case 2)"

    # 3) Multi-tile M and N: exercises M-outer loop order + deeper buffering of resident x.
    x, w, b = _make_inputs(jax.random.PRNGKey(2), 2, 256, 128, 512)
    y = jax.block_until_ready(geglu_proj(x, w, b, tm=256, tn=128))
    assert y.shape == (2, 256, 512)
    assert jnp.allclose(y, geglu_ref(x, w, b), atol=1e-4, rtol=1e-4), "mismatch (case 3)"

    # 4) Multi-tile with weights resident (N-outer) + Buffered(3) weight prefetch.
    x, w, b = _make_inputs(jax.random.PRNGKey(3), 2, 512, 256, 256)
    y = jax.block_until_ready(geglu_proj(x, w, b, tm=128, tn=128))
    assert y.shape == (2, 512, 256)
    assert jnp.allclose(y, geglu_ref(x, w, b), atol=1e-4, rtol=1e-4), "mismatch (case 4)"

    # 5) K (in_dim) tiling path with accumulator scratch (forced small tk).
    x, w, b = _make_inputs(jax.random.PRNGKey(4), 2, 16, 256, 128)
    y = jax.block_until_ready(geglu_proj(x, w, b, tk=128))
    assert y.shape == (2, 16, 128)
    assert jnp.allclose(y, geglu_ref(x, w, b), atol=1e-4, rtol=1e-4), "mismatch (case 5)"

    # 6) bf16 MXU path (f32 accumulation + f32 GELU epilogue), loose tolerance.
    x, w, b = _make_inputs(jax.random.PRNGKey(5), 2, 8, 32, 32)
    y = jax.block_until_ready(geglu_proj(x, w, b, compute_dtype=jnp.bfloat16))
    assert jnp.allclose(y, geglu_ref(x, w, b), atol=1e-1, rtol=1e-1), "mismatch (case 6)"

    print("KERNEL_OK")
</pallas_src>

<mosaic_0001>
module attributes {stable_mosaic.version = 11 : i64} {
  func.func @_geglu_kernel(%arg0: i32, %arg1: i32, %arg2: memref<16x32xf32, #tpu.memory_space<vmem>>, %arg3: memref<32x32xf32, #tpu.memory_space<vmem>>, %arg4: memref<32x32xf32, #tpu.memory_space<vmem>>, %arg5: memref<2x32xf32, #tpu.memory_space<vmem>>, %arg6: memref<16x32xf32, #tpu.memory_space<vmem>>) attributes {dimension_semantics = [#tpu.dimension_semantics<parallel>, #tpu.dimension_semantics<parallel>], iteration_bounds = array<i64: 1, 1>, scalar_prefetch = 0 : i64, scratch_operands = 0 : i64, tpu.core_type = #tpu.core_type<tc>, window_params = [{transform_indices = @transform_0, window_bounds = array<i64: 16, 32>}, {transform_indices = @transform_1, window_bounds = array<i64: 32, 32>}, {transform_indices = @transform_2, window_bounds = array<i64: 32, 32>}, {transform_indices = @transform_3, window_bounds = array<i64: 2, 32>}, {transform_indices = @transform_4, window_bounds = array<i64: 16, 32>}]} {
    %c0 = arith.constant 0 : index
    %c0_0 = arith.constant 0 : index
    %0 = vector.load %arg2[%c0, %c0_0] : memref<16x32xf32, #tpu.memory_space<vmem>>, vector<16x32xf32>
    %c0_1 = arith.constant 0 : index
    %c0_2 = arith.constant 0 : index
    %1 = vector.load %arg5[%c0_1, %c0_2] : memref<2x32xf32, #tpu.memory_space<vmem>>, vector<2x32xf32>
    %c0_3 = arith.constant 0 : index
    %c0_4 = arith.constant 0 : index
    %2 = vector.load %arg3[%c0_3, %c0_4] : memref<32x32xf32, #tpu.memory_space<vmem>>, vector<32x32xf32>
    %cst = arith.constant dense<0.000000e+00> : vector<16x32xf32>
    %3 = tpu.matmul %0, %2, %cst {dimension_numbers = #tpu.dot_dimension_numbers<[1], [0], [0], [1], [0, 0, 1, 1], [], []>} : vector<16x32xf32>, vector<32x32xf32>, vector<16x32xf32> -> vector<16x32xf32>
    %4 = vector.extract_strided_slice %1 {offsets = [0, 0], sizes = [1, 32], strides = [1, 1]} : vector<2x32xf32> to vector<1x32xf32>
    %5 = vector.broadcast %4 : vector<1x32xf32> to vector<16x32xf32>
    %6 = arith.addf %3, %5 : vector<16x32xf32>
    %c0_5 = arith.constant 0 : index
    %c0_6 = arith.constant 0 : index
    %7 = vector.load %arg4[%c0_5, %c0_6] : memref<32x32xf32, #tpu.memory_space<vmem>>, vector<32x32xf32>
    %cst_7 = arith.constant dense<0.000000e+00> : vector<16x32xf32>
    %8 = tpu.matmul %0, %7, %cst_7 {dimension_numbers = #tpu.dot_dimension_numbers<[1], [0], [0], [1], [0, 0, 1, 1], [], []>} : vector<16x32xf32>, vector<32x32xf32>, vector<16x32xf32> -> vector<16x32xf32>
    %9 = vector.extract_strided_slice %1 {offsets = [1, 0], sizes = [1, 32], strides = [1, 1]} : vector<2x32xf32> to vector<1x32xf32>
    %10 = vector.broadcast %9 : vector<1x32xf32> to vector<16x32xf32>
    %11 = arith.addf %8, %10 : vector<16x32xf32>
    %cst_8 = arith.constant 5.000000e-01 : f32
    %12 = vector.broadcast %cst_8 : f32 to vector<16x32xf32>
    %13 = arith.mulf %12, %11 : vector<16x32xf32>
    %cst_9 = arith.constant 0.707106769 : f32
    %14 = vector.broadcast %cst_9 : f32 to vector<16x32xf32>
    %15 = arith.mulf %11, %14 : vector<16x32xf32>
    %16 = math.erf %15 : vector<16x32xf32>
    %cst_10 = arith.constant 1.000000e+00 : f32
    %17 = vector.broadcast %cst_10 : f32 to vector<16x32xf32>
    %18 = arith.addf %17, %16 : vector<16x32xf32>
    %19 = arith.mulf %13, %18 : vector<16x32xf32>
    %20 = arith.mulf %6, %19 : vector<16x32xf32>
    %c0_11 = arith.constant 0 : index
    %c0_12 = arith.constant 0 : index
    %21 = vector.load %arg6[%c0_11, %c0_12] : memref<16x32xf32, #tpu.memory_space<vmem>>, vector<16x32xf32>
    tpu.vector_store %arg6[%c0_11, %c0_12], %20 {strides = array<i32>} : memref<16x32xf32, #tpu.memory_space<vmem>>, vector<16x32xf32>,
    return
  }
  func.func @transform_0(%arg0: i32, %arg1: i32) -> (i32, i32) {
    %c0_i32 = arith.constant 0 : i32
    %c0_i32_0 = arith.constant 0 : i32
    return %arg1, %c0_i32 : i32, i32
  }
  func.func @transform_1(%arg0: i32, %arg1: i32) -> (i32, i32) {
    %c0_i32 = arith.constant 0 : i32
    %c0_i32_0 = arith.constant 0 : i32
    return %c0_i32, %arg0 : i32, i32
  }
  func.func @transform_2(%arg0: i32, %arg1: i32) -> (i32, i32) {
    %c0_i32 = arith.constant 0 : i32
    %c0_i32_0 = arith.constant 0 : i32
    return %c0_i32, %arg0 : i32, i32
  }
  func.func @transform_3(%arg0: i32, %arg1: i32) -> (i32, i32) {
    %c0_i32 = arith.constant 0 : i32
    %c0_i32_0 = arith.constant 0 : i32
    return %c0_i32, %arg0 : i32, i32
  }
  func.func @transform_4(%arg0: i32, %arg1: i32) -> (i32, i32) {
    %c0_i32 = arith.constant 0 : i32
    return %arg1, %arg0 : i32, i32
  }
}

</mosaic_0001>

<bundles_post_ra>
// kernel: tpu_custom_call.1
= control target key start
LH: loop header
LB: loop body
LE: loop exit
PB: predicated region body
PF: predicated region fallthrough
CT: control target
= control target key end

     0   :  { %9 = vsyncpa [#allocation3], 0  ;;  %s465_s0 = inlined_call_operand.hbm [shape: f32[16,32], index: 0, kind: input, shape index: {}]   ;;  %s466_s1 = inlined_call_operand.hbm [shape: f32[32,32], index: 1, kind: input, shape index: {}]   ;;  %s467_s2 = inlined_call_operand.hbm [shape: f32[32,32], index: 2, kind: input, shape index: {}]   ;;  %s468_s3 = inlined_call_operand.vmem [shape: f32[2,32], index: 3, kind: input, shape index: {}]   ;;  %s469_s4 = inlined_call_operand.hbm [shape: f32[16,32], index: 4, kind: output, shape index: {}]  }
   0x1   :  { %10 = vsyncpa [#allocation6], 0 }
   0x2   :  { %11 = vsyncpa [#allocation4], 0  ;;  %s401_s15 = smov [#allocation5]   ;;  %s402_s17 = smov [#allocation2]  }
   0x3   :  { %s29_s16 = sshll.u32 %s401_s15, 4  ;;  %s17_s18 = sshll.u32 %s402_s17, 4  ;;  %s30_s16 = int_to_ptr.vmem [resolvable:$true] %s29_s16  ;;  %s18_s18 = int_to_ptr.vmem [resolvable:$true] %s17_s18 }
   0x4   :  { %s323_s19 = scalar_lea.vmem %s30_s16, 512  ;;  %p328_p1 = scmp.lt.s32.totalorder %s30_s16, %s30_s16 }
   0x5   :  { %p324_p0 = scmp.ne.s32.totalorder %s30_s16, %s323_s19  ;;  %p329_p2 = scmp.lt.s32.totalorder %s323_s19, %s323_s19 }
   0x7   :  { %p330_p3 = por %p329_p2, %p328_p1 }
   0x9   :  { %p331_p4 = pnand %p330_p3, %p324_p0 }
   0xb   :  { %334 = shalt.err (!%p331_p4)
}
   0xc   :  { %s403_s20 = smov 128   ;;  %s404_s21 = smov 8  }
   0xd   :  { %35 = dma.hbm_to_vmem [thread:$0]  %s466_s1, 512, %s30_s16, [#allocation6], %s403_s20, %s403_s20, %s404_s21  }
   0xe   :  { %s343_s24 = scalar_lea.vmem %s18_s18, 256  ;;  %p348_p6 = scmp.lt.s32.totalorder %s18_s18, %s18_s18 }
   0xf   :  { %p344_p5 = scmp.ne.s32.totalorder %s18_s18, %s343_s24  ;;  %p349_p7 = scmp.lt.s32.totalorder %s343_s24, %s343_s24 }
  0x11   :  { %p350_p8 = por %p349_p7, %p348_p6 }
  0x13   :  { %p351_p9 = pnand %p350_p8, %p344_p5 }
  0x15   :  { %354 = shalt.err (!%p351_p9)
}
  0x16   :  { %23 = dma.hbm_to_vmem [thread:$0]  %s465_s0, 256, %s18_s18, [#allocation3], %s403_s20, %s403_s20, %s404_s21  }
  0x17   :  { %s405_s27 = smov [#allocation7]  }
  0x18   :  { %s41_s28 = sshll.u32 %s405_s27, 4  ;;  %s42_s28 = int_to_ptr.vmem [resolvable:$true] %s41_s28 }
  0x19   :  { %s363_s29 = scalar_lea.vmem %s42_s28, 512  ;;  %p368_p11 = scmp.lt.s32.totalorder %s42_s28, %s42_s28 }
  0x1a   :  { %p364_p10 = scmp.ne.s32.totalorder %s42_s28, %s363_s29  ;;  %p369_p12 = scmp.lt.s32.totalorder %s363_s29, %s363_s29 }
  0x1c   :  { %p370_p13 = por %p369_p12, %p368_p11 }
  0x1e   :  { %p371_p0 = pnand %p370_p13, %p364_p10 }
  0x20   :  { %374 = shalt.err (!%p371_p0)
}
  0x21   :  { %47 = dma.hbm_to_vmem [thread:$0]  %s467_s2, 512, %s42_s28, [#allocation6], %s403_s20, %s403_s20, %s404_s21  }
  0x22   :  { %395 = dma.done.wait [#allocation3], 256  }
  0x23   :  { %396 = vsyncadd [#allocation3], 4294967040 }
  0x24   :  { %397 = dma.done.wait [#allocation6], 1024  }
  0x25   :  { %398 = vsyncadd [#allocation6], 4294966272  ;;  %vm70_vm0 = vcmask 261120   ;;  %v155_v0 = vld [vmem:[#allocation7 + $0x18] sm:$0xff]  ;;  %v154_v1 = vld [vmem:[#allocation7 + $0x10] sm:$0xff]  ;;  %v66_v10 = vlaneseq }
  0x26   :  { %294 = vmatprep.subr.mxu1 %v155_v0  ;;  %v59_v2 = vld [vmem:[#allocation2] sm:$0xff]  ;;  %v153_v3 = vld [vmem:[#allocation7 + $0x8] sm:$0xff]  ;;  %v65_v4 = vld [vmem:[#allocation5 + $0x18] sm:$0xff] }
  0x27   :  { %295 = vmatpush3.msra.mxu1 %v155_v0  ;;  %302 = vmatprep.mubr.msk.f32.mxu1 %vm70_vm0, %v59_v2  ;;  %v64_v5 = vld [vmem:[#allocation5 + $0x10] sm:$0xff]  ;;  %v152_v6 = vld [vmem:[#allocation7] sm:$0xff]  ;;  %v63_v7 = vld [vmem:[#allocation5 + $0x8] sm:$0xff]  ;;  %v67_v11 = vshrl.u32 %v66_v10, 7 }
  0x28   :  { %296 = vmatprep.subr.mxu1 %v154_v1  ;;  %283 = vmatprep.subr.mxu0 %v65_v4  ;;  %v60_v8 = vld [vmem:[#allocation2 + $0x8] sm:$0xff]  ;;  %v62_v9 = vld [vmem:[#allocation5] sm:$0xff]  ;;  %v61_v13 = vld [vmem:[%s468_s3] sm:$0x3]  ;;  %s406_s3 = smov [#allocation8]  }
  0x29   :  { %297 = vmatpush3.msra.mxu1 %v154_v1  ;;  %284 = vmatpush3.msra.mxu0 %v65_v4  ;;  %v158_v12 = vsub.s32 1, %v67_v11  ;;  %v68_v21 = vsub.s32 0, %v67_v11  ;;  %s254_s5 = sshll.u32 %s406_s3, 4  ;;  %s255_s5 = int_to_ptr.vmem [resolvable:$true] %s254_s5 }
  0x2a   :  { %298 = vmatprep.subr.mxu1 %v153_v3  ;;  %285 = vmatprep.subr.mxu0 %v64_v5  ;;  %s375_s6 = scalar_lea.vmem %s255_s5, 256  ;;  %p380_p2 = scmp.lt.s32.totalorder %s255_s5, %s255_s5 }
  0x2b   :  { %299 = vmatpush3.msra.mxu1 %v153_v3  ;;  %286 = vmatpush3.msra.mxu0 %v64_v5  ;;  %v159_v14 = vrot.slane %v61_v13, %v158_v12  ;;  %v69_v22 = vrot.slane %v61_v13, %v68_v21  ;;  %p376_p1 = scmp.ne.s32.totalorder %s255_s5, %s375_s6  ;;  %p381_p3 = scmp.lt.s32.totalorder %s375_s6, %s375_s6 }
  0x2c   :  { %300 = vmatprep.subr.mxu1 %v152_v6  ;;  %287 = vmatprep.subr.mxu0 %v63_v7 }
  0x2d   :  { %301 = vmatpush3.msra.mxu1 %v152_v6  ;;  %288 = vmatpush3.msra.mxu0 %v63_v7  ;;  %p382_p4 = por %p381_p3, %p380_p2 }
  0x2e   :  { %303 = vmatmul.mubr.msk.f32.vlgmr.msra.gmra.mxu1 %vm70_vm0, %v60_v8  ;;  %289 = vmatprep.subr.mxu0 %v62_v9 }
  0x2f   :  { %290 = vmatpush3.msra.mxu0 %v62_v9  ;;  %291 = vmatprep.mubr.msk.f32.mxu0 %vm70_vm0, %v59_v2  ;;  %p383_p5 = pnand %p382_p4, %p376_p1 }
  0x30   :  { %292 = vmatmul.mubr.msk.f32.vlgmr.msra.gmra.mxu0 %vm70_vm0, %v60_v8 }
  0xee   :  { %v304_v15 = vpop.f32.mrf.mxu1 }
  0xef   :  { %v232_v16 = vadd.f32 %v304_v15, %v159_v14 }
  0xf0   :  { %v226_v17 = vpop.f32.mrf.mxu1  ;;  %v293_v23 = vpop.f32.mrf.mxu0 }
  0xf1   :  { %v238_v18 = vmul.f32 0.70710677, %v232_v16  ;;  %v227_v19 = vadd.f32 %v226_v17, %v159_v14  ;;  %v236_v25 = vmul.f32 0.5, %v232_v16  ;;  %v149_v26 = vadd.f32 %v293_v23, %v69_v22 }
  0xf2   :  { %v143_v29 = vpop.f32.mrf.mxu0 }
  0xf3   :  { %311 = verf.f32 %v238_v18  ;;  %v237_v20 = vmul.f32 0.70710677, %v227_v19  ;;  %v235_v30 = vmul.f32 0.5, %v227_v19  ;;  %v144_v34 = vadd.f32 %v143_v29, %v69_v22 }
  0xf5   :  { %313 = verf.f32 %v237_v20 }
 0x100   :  { %v312_v24 = vpop.eup %311 }
 0x101   :  { %v242_v27 = vadd.f32 1.0, %v312_v24 }
 0x102   :  { %v314_v28 = vpop.eup %313 }
 0x103   :  { %v244_v31 = vmul.f32 %v242_v27, %v236_v25  ;;  %v241_v32 = vadd.f32 1.0, %v314_v28 }
 0x105   :  { %v246_v33 = vmul.f32 %v244_v31, %v149_v26  ;;  %v243_v35 = vmul.f32 %v241_v32, %v235_v30 }
 0x107   :  { %248 = vst.msk [vmem:[#allocation8 + $0x8] sm:$0xff] %vm70_vm0, %v246_v33  ;;  %v245_v36 = vmul.f32 %v243_v35, %v144_v34 }
 0x109   :  { %247 = vst.msk [vmem:[#allocation8] sm:$0xff] %vm70_vm0, %v245_v36 }
 0x10a   :  { %386 = shalt.err (!%p383_p5)
}
 0x10b   :  { %260 = dma.vmem_to_hbm [thread:$0]  %s255_s5, 256, %s469_s4, [#allocation4], %s403_s20, %s403_s20, %s404_s21  }
 0x10c   :  { %399 = dma.done.wait [#allocation4], 256  }
 0x10d   :  { %400 = vsyncadd [#allocation4], 4294967040 }
 0x10e   :  { %264 = vsyncpa [#allocation3], 1 }
 0x10f   :  { %265 = vsyncpa [#allocation6], 1 }
 0x110   :  { %266 = vsyncpa [#allocation4], 1 }

</bundles_post_ra>
